<compile_context>
chip_gen: v7x
topology: tpu7x:2x2x1
jax: 0.10.0
libtpu: 0.0.40
codegen_flags: <defaults>
</compile_context>

<pallas_src>
import math

import jax
import jax.numpy as jnp
from jax.experimental import pallas as pl
from jax.experimental.pallas import tpu as pltpu


# rows inside the packed bias/vector block (one (1, <=H) row each)
_VEC_B1, _VEC_BTSC, _VEC_BG1, _VEC_BG2, _VEC_BG3, _VEC_VA, _VEC_VB, _NUM_VEC = range(8)


def _sinusoid(time, B, T):
    """transformer_timestep_embedding (sin/cos), tiny transcendental setup done in XLA."""
    half = T // 2
    freqs = jnp.exp(jnp.arange(half, dtype=jnp.float32)
                    * -(math.log(10000.0) / (half - 1)))
    arg = time.reshape(B).astype(jnp.float32)[:, None] * freqs[None, :]
    return jnp.concatenate([jnp.sin(arg), jnp.cos(arg)], axis=1)            # (B, T)


def _make_kernel(B, N, H, T, off):
    BN = B * N

    def kernel(adj_bd_ref, sin_ref, slab_ref, out_ref):
        f32 = jnp.float32

        def w(name, rows, cols):                        # static slice of the packed slab
            r0 = off[name]
            return slab_ref[r0:r0 + rows, :cols]

        def v(row, cols):                               # one packed bias/vector row
            r0 = off["vec"] + row
            return slab_ref[r0:r0 + 1, :cols]

        # ---- time path: sinusoid -> Linear -> ReLU; 2nd Linear folded downstream --------
        t1 = jnp.maximum(
            jnp.dot(sin_ref[...], w("w1", T, H), preferred_element_type=f32)
            + v(_VEC_B1, H), 0.0)                                            # (B, H)
        u = (jnp.dot(t1, w("wtsc", H, N + 1), preferred_element_type=f32)
             + v(_VEC_BTSC, N + 1))                                          # (B, N+1)
        tfeat = jnp.maximum(u[:, :N], 0.0)     # per-node time features (time_emb head)
        sc = u[:, N:N + 1]                     # per-graph constant term of the edge head

        # ---- gcn_norm on the block-diagonal batch graph (symmetric 0/1 adjacency) -------
        r = jax.lax.broadcasted_iota(jnp.int32, (BN, BN), 0)
        c = jax.lax.broadcasted_iota(jnp.int32, (BN, BN), 1)
        eye = (r == c).astype(f32)
        ahat = jnp.maximum((adj_bd_ref[...] != 0).astype(f32), eye)   # A + remaining self loops
        dr = jax.lax.rsqrt(jnp.sum(ahat, axis=1, keepdims=True))      # (BN, 1)   EUP
        dc = jax.lax.rsqrt(jnp.sum(ahat, axis=0, keepdims=True))      # (1, BN)  (= dr.T, symmetric)
        a_prop = dr * ahat * dc                                       # (BN, BN)

        # ---- 3 GCN hops, activations kept 2-D (B*N, H); BN folded, dropout eval no-op ---
        # gcn_1 input = [one-hot id | tfeat]: I @ Wg1a == Wg1a, time half is rank-1.
        tproj = jnp.dot(tfeat, w("wg1b", N, H), preferred_element_type=f32)       # (B, H)
        xlin1 = (w("wg1a", N, H)[None, :, :] + tproj[:, None, :]).reshape(BN, H)  # (BN, H)
        h1 = jnp.maximum(
            jnp.dot(a_prop, xlin1, preferred_element_type=f32) + v(_VEC_BG1, H), 0.0)
        h2 = jnp.maximum(
            jnp.dot(a_prop, jnp.dot(h1, w("wg2", H, H), preferred_element_type=f32),
                    preferred_element_type=f32) + v(_VEC_BG2, H), 0.0)
        h3 = jnp.maximum(
            jnp.dot(a_prop, jnp.dot(h2, w("wg3", H, H), preferred_element_type=f32),
                    preferred_element_type=f32) + v(_VEC_BG3, H), 0.0)            # (BN, H)

        # ---- collapsed edge head: score[b,i,j] = pa[b,i] + qa[b,j] + sc[b], diag zeroed -
        h3_3d = h3.reshape(B, N, H)                                    # free leading split
        pa = jnp.sum(h3_3d * v(_VEC_VA, H), axis=-1)                   # (B, N)  x_i term
        qa = jnp.sum(h3_3d * v(_VEC_VB, H), axis=-1)                   # (B, N)  x_j term
        pq = jnp.concatenate([pa, qa], axis=-1)                        # (B, 2N)

        sel = w("sel", 2 * N, N * N)                                   # 0/1, diag pre-masked
        offd = slab_ref[off["sel"] + 2 * N: off["sel"] + 2 * N + 1, :N * N]   # (1, N*N)
        out_ref[...] = jnp.dot(pq, sel, preferred_element_type=f32) + sc * offd

    return kernel


def make_forward(N, H, T, off):
    @jax.jit
    def forward(X, time, slab):
        """X: (B, N*N) flattened adjacency, time: (B,). Returns (B, N, N, 1)."""
        f32 = jnp.float32
        B = X.shape[0]
        adj = X.reshape(B, N, N).astype(f32)
        # block-diagonal batch graph (pure layout plumbing; off-blocks are zero)
        eye_b = jnp.eye(B, dtype=f32)
        adj_bd = (adj[:, :, None, :] * eye_b[:, None, :, None]).reshape(B * N, B * N)
        sinemb = _sinusoid(time, B, T)

        out_flat = pl.pallas_call(
            _make_kernel(B, N, H, T, off),
            out_shape=jax.ShapeDtypeStruct((B, N * N), f32),           # lane-dense (N*N = 256)
            in_specs=[pl.BlockSpec(memory_space=pltpu.MemorySpace.VMEM)] * 3,
            out_specs=pl.BlockSpec(memory_space=pltpu.MemorySpace.VMEM),
        )(adj_bd, sinemb, slab)
        return out_flat.reshape(B, N, N, 1)

    return forward


def _pack(blocks, width):
    """Pack named 2-D blocks into one (rows, width) f32 slab; every block start row is
    aligned to 8 sublanes.  Returns (slab, {name: start_row})."""
    off, parts, row = {}, [], 0
    for name, arr in blocks:
        arr = jnp.asarray(arr, jnp.float32)
        h, wdt = arr.shape
        assert wdt <= width, (name, wdt, width)
        hp = pl.cdiv(h, 8) * 8
        parts.append(jnp.zeros((hp, width), jnp.float32).at[:h, :wdt].set(arr))
        off[name] = row
        row += hp
    return jnp.concatenate(parts, axis=0), off


def init_params(key, N, H, T):
    """Synthetic init matching the PyTorch module (xavier-uniform Linears, zero biases,
    default eval BatchNorm stats), with all folds applied:
      * every BatchNorm folded into the adjacent Linear,
      * Time_embedding's 2nd Linear folded into its two linear consumers,
      * the two edge Linears collapsed (no nonlinearity between them) into per-node
        vectors va/vb and a scalar bias,
      * a (2N+1, N*N) 0/1 selection matrix (diagonal mask folded in) that expands the
        per-node scores into the flattened edge-score map.
    Returns (slab, offsets, raw) where `raw` holds BN-folded-but-uncollapsed weights for
    the pure-JAX reference."""
    eps = 1e-5
    f32 = jnp.float32

    def xavier(k, fi, fo):
        bound = math.sqrt(6.0 / (fi + fo))
        return jax.random.uniform(k, (fi, fo), f32, -bound, bound)

    def bn_fold(c):
        gamma = jnp.ones((c,), f32)
        beta = jnp.zeros((c,), f32)
        mean = jnp.zeros((c,), f32)
        var = jnp.ones((c,), f32)
        scale = gamma * jax.lax.rsqrt(var + eps)
        shift = beta - mean * scale
        return scale, shift

    ks = jax.random.split(key, 8)

    # Time_embedding: Linear(T, H) -> ReLU -> Linear(H, H)
    w1 = xavier(ks[0], T, H); b1 = jnp.zeros((1, H), f32)
    w2 = xavier(ks[1], H, H); b2 = jnp.zeros((1, H), f32)

    # TemporalGCNBlock.time_emb: Linear(H, N) + BatchNorm1d(N)   (BN folded)
    st, sht = bn_fold(N)
    wt = xavier(ks[2], H, N) * st[None, :]
    bt = sht[None, :]

    # gcn_1: Linear(2N, H) + BatchNorm(H); rows [0,N): one-hot id, [N,2N): time feats
    s1, sh1 = bn_fold(H)
    wg1 = xavier(ks[3], 2 * N, H) * s1[None, :]
    wg1a, wg1b = wg1[:N, :], wg1[N:, :]
    bg1 = sh1[None, :]

    # gcn_2, gcn_3: Linear(H, H) + BatchNorm(H)
    s2, sh2 = bn_fold(H); wg2 = xavier(ks[4], H, H) * s2[None, :]; bg2 = sh2[None, :]
    s3, sh3 = bn_fold(H); wg3 = xavier(ks[5], H, H) * s3[None, :]; bg3 = sh3[None, :]

    # edge_encoding_0: Linear(2H, H) + BatchNorm1d(H)   (x_i / x_j halves)
    s0, sh0 = bn_fold(H)
    we0 = xavier(ks[6], 2 * H, H) * s0[None, :]
    we0a, we0b = we0[:H, :], we0[H:, :]
    be0 = sh0[None, :]

    # edge_encoding: Linear(2H, 1) + BatchNorm1d(1)     (e0 / temb halves)
    se, she = bn_fold(1)
    we = xavier(ks[7], 2 * H, 1) * se[None, :]
    wea_col = we[:H, :]                     # (H, 1) multiplies e0
    web_col = we[H:, :]                     # (H, 1) multiplies temb
    be = she.reshape(1, 1)

    # --- collapse of the edge head (no nonlinearity between the two edge Linears) -------
    va = (we0a @ wea_col).T                 # (1, H): per-node x_i projection
    vb = (we0b @ wea_col).T                 # (1, H): per-node x_j projection
    cbias = be0 @ wea_col + be              # (1, 1)

    # --- fold Time_embedding's 2nd Linear (w2, b2) into its two linear consumers --------
    wtf = w2 @ wt                           # (H, N)   temb -> per-node time features
    btf = b2 @ wt + bt                      # (1, N)
    wsc = w2 @ web_col                      # (H, 1)   temb -> edge-head constant
    bsc = b2 @ web_col + cbias              # (1, 1)
    wtsc = jnp.concatenate([wtf, wsc], axis=1)     # (H, N+1)
    btsc = jnp.concatenate([btf, bsc], axis=1)     # (1, N+1)

    # --- selection matrix (diag mask folded in): flat[b, i*N+j] = pa[b,i]+qa[b,j]+sc[b] --
    k = jnp.arange(N * N)
    ik, jk = k // N, k % N
    offd = (ik != jk).astype(f32)
    sel_i = (jnp.arange(N)[:, None] == ik[None, :]).astype(f32) * offd[None, :]
    sel_j = (jnp.arange(N)[:, None] == jk[None, :]).astype(f32) * offd[None, :]
    sel = jnp.concatenate([sel_i, sel_j, offd[None, :]], axis=0)   # (2N+1, N*N)

    # --- packed bias / vector rows -------------------------------------------------------
    vw = max(H, N + 1)
    vecs = jnp.zeros((_NUM_VEC, vw), f32)
    vecs = vecs.at[_VEC_B1, :H].set(b1[0])
    vecs = vecs.at[_VEC_BTSC, :N + 1].set(btsc[0])
    vecs = vecs.at[_VEC_BG1, :H].set(bg1[0])
    vecs = vecs.at[_VEC_BG2, :H].set(bg2[0])
    vecs = vecs.at[_VEC_BG3, :H].set(bg3[0])
    vecs = vecs.at[_VEC_VA, :H].set(va[0])
    vecs = vecs.at[_VEC_VB, :H].set(vb[0])

    blocks = [("w1", w1), ("wtsc", wtsc), ("wg1a", wg1a), ("wg1b", wg1b),
              ("wg2", wg2), ("wg3", wg3), ("sel", sel), ("vec", vecs)]
    slab, off = _pack(blocks, width=N * N)      # (208, 256) f32 for N=16, H=T=32

    raw = dict(w1=w1, b1=b1, w2=w2, b2=b2, wt=wt, bt=bt,
               wg1=wg1, bg1=bg1, wg2=wg2, bg2=bg2, wg3=wg3, bg3=bg3,
               we0=we0, be0=be0, we=we, be=be)
    return slab, off, raw


def reference_forward(X, time, p, N, H, T):
    """Pure-JAX dense reference of SimpleTemporalGCN.forward (eval mode) using the
    BN-folded-but-uncollapsed weights; validates the kernel's algebraic folds."""
    f32 = jnp.float32
    B = X.shape[0]
    adj = X.reshape(B, N, N).astype(f32)

    sin = _sinusoid(time, B, T)
    t1 = jnp.maximum(sin @ p["w1"] + p["b1"], 0.0)
    temb = t1 @ p["w2"] + p["b2"]                                        # (B, H)
    tfeat = jnp.maximum(temb @ p["wt"] + p["bt"], 0.0)                   # (B, N)

    onehot = jnp.eye(N, dtype=f32)
    xfeat = jnp.concatenate(
        [jnp.broadcast_to(onehot[None], (B, N, N)),
         jnp.broadcast_to(tfeat[:, None, :], (B, N, N))], axis=-1)       # (B, N, 2N)

    eye = jnp.eye(N, dtype=f32)
    ahat = jnp.maximum((adj != 0).astype(f32), eye[None])
    deg = jnp.sum(ahat, axis=-1)
    dinv = 1.0 / jnp.sqrt(deg)
    aprop = dinv[:, :, None] * ahat * dinv[:, None, :]                   # (B, N, N)

    h = xfeat
    for w, b in ((p["wg1"], p["bg1"]), (p["wg2"], p["bg2"]), (p["wg3"], p["bg3"])):
        h = jnp.maximum(jnp.einsum("bij,bjh->bih", aprop, h @ w) + b, 0.0)

    xi = jnp.broadcast_to(h[:, :, None, :], (B, N, N, H))
    xj = jnp.broadcast_to(h[:, None, :, :], (B, N, N, H))
    e0 = jnp.concatenate([xi, xj], axis=-1) @ p["we0"] + p["be0"]        # (B, N, N, H)
    te = jnp.broadcast_to(temb[:, None, None, :], (B, N, N, H))
    score = jnp.concatenate([e0, te], axis=-1) @ p["we"] + p["be"]       # (B, N, N, 1)
    return score * (1.0 - eye)[None, :, :, None]


if __name__ == "__main__":
    B, N, H, T = 2, 16, 32, 32     # batch, max_node_num, hidden_channels, time_embed_dim
    key = jax.random.PRNGKey(0)
    kx, kt, kp = jax.random.split(key, 3)

    # symmetric binary adjacency with zero diagonal, flattened as the module expects
    u = jax.random.uniform(kx, (B, N, N))
    a = (u + jnp.swapaxes(u, 1, 2) > 1.0).astype(jnp.float32)
    a = a * (1.0 - jnp.eye(N, dtype=jnp.float32)[None])
    X = a.reshape(B, N * N)
    time = jax.random.uniform(kt, (B,), jnp.float32)

    slab, off, raw = init_params(kp, N, H, T)
    forward = make_forward(N, H, T, off)

    out = jax.block_until_ready(forward(X, time, slab))
    assert out.shape == (B, N, N, 1), out.shape

    # pure-JAX reference check of the folded kernel algebra
    with jax.default_matmul_precision("highest"):
        ref = jax.block_until_ready(reference_forward(X, time, raw, N, H, T))
    err = float(jnp.max(jnp.abs(out - ref)))
    assert err < 2e-3, f"max |kernel - reference| = {err}"

    print("KERNEL_OK")
</pallas_src>

<mosaic_0001>
module attributes {stable_mosaic.version = 11 : i64} {
  func.func @kernel(%arg0: memref<32x32xf32, #tpu.memory_space<vmem>>, %arg1: memref<2x32xf32, #tpu.memory_space<vmem>>, %arg2: memref<208x256xf32, #tpu.memory_space<vmem>>, %arg3: memref<2x256xf32, #tpu.memory_space<vmem>>) attributes {dimension_semantics = [], scalar_prefetch = 0 : i64, scratch_operands = 0 : i64, tpu.core_type = #tpu.core_type<tc>} {
    %c0 = arith.constant 0 : index
    %c0_0 = arith.constant 0 : index
    %0 = vector.load %arg1[%c0, %c0_0] : memref<2x32xf32, #tpu.memory_space<vmem>>, vector<2x32xf32>
    %c0_1 = arith.constant 0 : index
    %c0_2 = arith.constant 0 : index
    %1 = vector.load %arg2[%c0_1, %c0_2] : memref<208x256xf32, #tpu.memory_space<vmem>>, vector<32x32xf32>
    %cst = arith.constant dense<0.000000e+00> : vector<2x32xf32>
    %2 = tpu.matmul %0, %1, %cst {dimension_numbers = #tpu.dot_dimension_numbers<[1], [0], [0], [1], [0, 0, 1, 1], [], []>} : vector<2x32xf32>, vector<32x32xf32>, vector<2x32xf32> -> vector<2x32xf32>
    %c200 = arith.constant 200 : index
    %c0_3 = arith.constant 0 : index
    %3 = vector.load %arg2[%c200, %c0_3] : memref<208x256xf32, #tpu.memory_space<vmem>>, vector<1x32xf32>
    %4 = vector.broadcast %3 : vector<1x32xf32> to vector<2x32xf32>
    %5 = arith.addf %2, %4 : vector<2x32xf32>
    %cst_4 = arith.constant 0.000000e+00 : f32
    %6 = vector.broadcast %cst_4 : f32 to vector<2x32xf32>
    %7 = arith.maximumf %5, %6 : vector<2x32xf32>
    %c32 = arith.constant 32 : index
    %c0_5 = arith.constant 0 : index
    %8 = vector.load %arg2[%c32, %c0_5] : memref<208x256xf32, #tpu.memory_space<vmem>>, vector<32x17xf32>
    %cst_6 = arith.constant dense<0.000000e+00> : vector<2x17xf32>
    %9 = tpu.matmul %7, %8, %cst_6 {dimension_numbers = #tpu.dot_dimension_numbers<[1], [0], [0], [1], [0, 0, 1, 1], [], []>} : vector<2x32xf32>, vector<32x17xf32>, vector<2x17xf32> -> vector<2x17xf32>
    %c201 = arith.constant 201 : index
    %c0_7 = arith.constant 0 : index
    %10 = vector.load %arg2[%c201, %c0_7] : memref<208x256xf32, #tpu.memory_space<vmem>>, vector<1x17xf32>
    %11 = vector.broadcast %10 : vector<1x17xf32> to vector<2x17xf32>
    %12 = arith.addf %9, %11 : vector<2x17xf32>
    %13 = vector.extract_strided_slice %12 {offsets = [0, 0], sizes = [2, 16], strides = [1, 1]} : vector<2x17xf32> to vector<2x16xf32>
    %cst_8 = arith.constant 0.000000e+00 : f32
    %14 = vector.broadcast %cst_8 : f32 to vector<2x16xf32>
    %15 = arith.maximumf %13, %14 : vector<2x16xf32>
    %16 = vector.extract_strided_slice %12 {offsets = [0, 16], sizes = [2, 1], strides = [1, 1]} : vector<2x17xf32> to vector<2x1xf32>
    %17 = tpu.iota {dimensions = array<i32: 0>} : vector<32x32xi32>
    %18 = tpu.iota {dimensions = array<i32: 1>} : vector<32x32xi32>
    %19 = arith.cmpi eq, %17, %18 : vector<32x32xi32>
    %20 = arith.extui %19 : vector<32x32xi1> to vector<32x32xi32>
    %21 = arith.sitofp %20 : vector<32x32xi32> to vector<32x32xf32>
    %c0_9 = arith.constant 0 : index
    %c0_10 = arith.constant 0 : index
    %22 = vector.load %arg0[%c0_9, %c0_10] : memref<32x32xf32, #tpu.memory_space<vmem>>, vector<32x32xf32>
    %cst_11 = arith.constant 0.000000e+00 : f32
    %23 = vector.broadcast %cst_11 : f32 to vector<32x32xf32>
    %24 = arith.cmpf one, %22, %23 : vector<32x32xf32>
    %25 = arith.extui %24 : vector<32x32xi1> to vector<32x32xi32>
    %26 = arith.sitofp %25 : vector<32x32xi32> to vector<32x32xf32>
    %27 = arith.maximumf %26, %21 : vector<32x32xf32>
    %cst_12 = arith.constant dense<0.000000e+00> : vector<32xf32>
    %28 = vector.multi_reduction <add>, %27, %cst_12 [1] : vector<32x32xf32> to vector<32xf32>
    %29 = vector.shape_cast %28 : vector<32xf32> to vector<32x1xf32>
    %30 = math.rsqrt %29 : vector<32x1xf32>
    %cst_13 = arith.constant dense<0.000000e+00> : vector<32xf32>
    %31 = vector.multi_reduction <add>, %27, %cst_13 [0] : vector<32x32xf32> to vector<32xf32>
    %32 = vector.shape_cast %31 : vector<32xf32> to vector<1x32xf32>
    %33 = math.rsqrt %32 : vector<1x32xf32>
    %34 = vector.broadcast %30 : vector<32x1xf32> to vector<32x32xf32>
    %35 = arith.mulf %34, %27 : vector<32x32xf32>
    %36 = vector.broadcast %33 : vector<1x32xf32> to vector<32x32xf32>
    %37 = arith.mulf %35, %36 : vector<32x32xf32>
    %c80 = arith.constant 80 : index
    %c0_14 = arith.constant 0 : index
    %38 = vector.load %arg2[%c80, %c0_14] : memref<208x256xf32, #tpu.memory_space<vmem>>, vector<16x32xf32>
    %cst_15 = arith.constant dense<0.000000e+00> : vector<2x32xf32>
    %39 = tpu.matmul %15, %38, %cst_15 {dimension_numbers = #tpu.dot_dimension_numbers<[1], [0], [0], [1], [0, 0, 1, 1], [], []>} : vector<2x16xf32>, vector<16x32xf32>, vector<2x32xf32> -> vector<2x32xf32>
    %c64 = arith.constant 64 : index
    %c0_16 = arith.constant 0 : index
    %40 = vector.load %arg2[%c64, %c0_16] : memref<208x256xf32, #tpu.memory_space<vmem>>, vector<16x32xf32>
    %41 = vector.shape_cast %40 : vector<16x32xf32> to vector<1x16x32xf32>
    %42 = vector.shape_cast %39 : vector<2x32xf32> to vector<2x1x32xf32>
    %43 = vector.broadcast %41 : vector<1x16x32xf32> to vector<2x16x32xf32>
    %44 = vector.broadcast %42 : vector<2x1x32xf32> to vector<2x16x32xf32>
    %45 = arith.addf %43, %44 : vector<2x16x32xf32>
    %46 = vector.shape_cast %45 : vector<2x16x32xf32> to vector<32x32xf32>
    %cst_17 = arith.constant dense<0.000000e+00> : vector<32x32xf32>
    %47 = tpu.matmul %37, %46, %cst_17 {dimension_numbers = #tpu.dot_dimension_numbers<[1], [0], [0], [1], [0, 0, 1, 1], [], []>} : vector<32x32xf32>, vector<32x32xf32>, vector<32x32xf32> -> vector<32x32xf32>
    %c202 = arith.constant 202 : index
    %c0_18 = arith.constant 0 : index
    %48 = vector.load %arg2[%c202, %c0_18] : memref<208x256xf32, #tpu.memory_space<vmem>>, vector<1x32xf32>
    %49 = vector.broadcast %48 : vector<1x32xf32> to vector<32x32xf32>
    %50 = arith.addf %47, %49 : vector<32x32xf32>
    %cst_19 = arith.constant 0.000000e+00 : f32
    %51 = vector.broadcast %cst_19 : f32 to vector<32x32xf32>
    %52 = arith.maximumf %50, %51 : vector<32x32xf32>
    %c96 = arith.constant 96 : index
    %c0_20 = arith.constant 0 : index
    %53 = vector.load %arg2[%c96, %c0_20] : memref<208x256xf32, #tpu.memory_space<vmem>>, vector<32x32xf32>
    %cst_21 = arith.constant dense<0.000000e+00> : vector<32x32xf32>
    %54 = tpu.matmul %52, %53, %cst_21 {dimension_numbers = #tpu.dot_dimension_numbers<[1], [0], [0], [1], [0, 0, 1, 1], [], []>} : vector<32x32xf32>, vector<32x32xf32>, vector<32x32xf32> -> vector<32x32xf32>
    %cst_22 = arith.constant dense<0.000000e+00> : vector<32x32xf32>
    %55 = tpu.matmul %37, %54, %cst_22 {dimension_numbers = #tpu.dot_dimension_numbers<[1], [0], [0], [1], [0, 0, 1, 1], [], []>} : vector<32x32xf32>, vector<32x32xf32>, vector<32x32xf32> -> vector<32x32xf32>
    %c203 = arith.constant 203 : index
    %c0_23 = arith.constant 0 : index
    %56 = vector.load %arg2[%c203, %c0_23] : memref<208x256xf32, #tpu.memory_space<vmem>>, vector<1x32xf32>
    %57 = vector.broadcast %56 : vector<1x32xf32> to vector<32x32xf32>
    %58 = arith.addf %55, %57 : vector<32x32xf32>
    %cst_24 = arith.constant 0.000000e+00 : f32
    %59 = vector.broadcast %cst_24 : f32 to vector<32x32xf32>
    %60 = arith.maximumf %58, %59 : vector<32x32xf32>
    %c128 = arith.constant 128 : index
    %c0_25 = arith.constant 0 : index
    %61 = vector.load %arg2[%c128, %c0_25] : memref<208x256xf32, #tpu.memory_space<vmem>>, vector<32x32xf32>
    %cst_26 = arith.constant dense<0.000000e+00> : vector<32x32xf32>
    %62 = tpu.matmul %60, %61, %cst_26 {dimension_numbers = #tpu.dot_dimension_numbers<[1], [0], [0], [1], [0, 0, 1, 1], [], []>} : vector<32x32xf32>, vector<32x32xf32>, vector<32x32xf32> -> vector<32x32xf32>
    %cst_27 = arith.constant dense<0.000000e+00> : vector<32x32xf32>
    %63 = tpu.matmul %37, %62, %cst_27 {dimension_numbers = #tpu.dot_dimension_numbers<[1], [0], [0], [1], [0, 0, 1, 1], [], []>} : vector<32x32xf32>, vector<32x32xf32>, vector<32x32xf32> -> vector<32x32xf32>
    %c204 = arith.constant 204 : index
    %c0_28 = arith.constant 0 : index
    %64 = vector.load %arg2[%c204, %c0_28] : memref<208x256xf32, #tpu.memory_space<vmem>>, vector<1x32xf32>
    %65 = vector.broadcast %64 : vector<1x32xf32> to vector<32x32xf32>
    %66 = arith.addf %63, %65 : vector<32x32xf32>
    %cst_29 = arith.constant 0.000000e+00 : f32
    %67 = vector.broadcast %cst_29 : f32 to vector<32x32xf32>
    %68 = arith.maximumf %66, %67 : vector<32x32xf32>
    %69 = vector.shape_cast %68 : vector<32x32xf32> to vector<2x16x32xf32>
    %c205 = arith.constant 205 : index
    %c0_30 = arith.constant 0 : index
    %70 = vector.load %arg2[%c205, %c0_30] : memref<208x256xf32, #tpu.memory_space<vmem>>, vector<1x32xf32>
    %71 = vector.shape_cast %70 : vector<1x32xf32> to vector<1x1x32xf32>
    %72 = vector.broadcast %71 : vector<1x1x32xf32> to vector<2x16x32xf32>
    %73 = arith.mulf %69, %72 : vector<2x16x32xf32>
    %cst_31 = arith.constant dense<0.000000e+00> : vector<2x16xf32>
    %74 = vector.multi_reduction <add>, %73, %cst_31 [2] : vector<2x16x32xf32> to vector<2x16xf32>
    %c206 = arith.constant 206 : index
    %c0_32 = arith.constant 0 : index
    %75 = vector.load %arg2[%c206, %c0_32] : memref<208x256xf32, #tpu.memory_space<vmem>>, vector<1x32xf32>
    %76 = vector.shape_cast %75 : vector<1x32xf32> to vector<1x1x32xf32>
    %77 = vector.broadcast %76 : vector<1x1x32xf32> to vector<2x16x32xf32>
    %78 = arith.mulf %69, %77 : vector<2x16x32xf32>
    %cst_33 = arith.constant dense<0.000000e+00> : vector<2x16xf32>
    %79 = vector.multi_reduction <add>, %78, %cst_33 [2] : vector<2x16x32xf32> to vector<2x16xf32>
    %80 = tpu.concatenate %74, %79 in 1 : vector<2x16xf32>, vector<2x16xf32> -> vector<2x32xf32>
    %c160 = arith.constant 160 : index
    %c0_34 = arith.constant 0 : index
    %81 = vector.load %arg2[%c160, %c0_34] : memref<208x256xf32, #tpu.memory_space<vmem>>, vector<32x256xf32>
    %c192 = arith.constant 192 : index
    %c0_35 = arith.constant 0 : index
    %82 = vector.load %arg2[%c192, %c0_35] : memref<208x256xf32, #tpu.memory_space<vmem>>, vector<1x256xf32>
    %cst_36 = arith.constant dense<0.000000e+00> : vector<2x256xf32>
    %83 = tpu.matmul %80, %81, %cst_36 {dimension_numbers = #tpu.dot_dimension_numbers<[1], [0], [0], [1], [0, 0, 1, 1], [], []>} : vector<2x32xf32>, vector<32x256xf32>, vector<2x256xf32> -> vector<2x256xf32>
    %84 = vector.broadcast %16 : vector<2x1xf32> to vector<2x256xf32>
    %85 = vector.broadcast %82 : vector<1x256xf32> to vector<2x256xf32>
    %86 = arith.mulf %84, %85 : vector<2x256xf32>
    %87 = arith.addf %83, %86 : vector<2x256xf32>
    %c0_37 = arith.constant 0 : index
    %c0_38 = arith.constant 0 : index
    %88 = vector.load %arg3[%c0_37, %c0_38] : memref<2x256xf32, #tpu.memory_space<vmem>>, vector<2x256xf32>
    tpu.vector_store %arg3[%c0_37, %c0_38], %87 {strides = array<i32>} : memref<2x256xf32, #tpu.memory_space<vmem>>, vector<2x256xf32>,
    return
  }
}

</mosaic_0001>

<bundles_post_ra>
// kernel: mul.16
= control target key start
LH: loop header
LB: loop body
LE: loop exit
PB: predicated region body
PF: predicated region fallthrough
CT: control target
= control target key end

     0   :  { %vm11_vm0 = vcmask 130048   ;;  %s77_s10 = smov 80   ;;  %s78_s15 = smov 96   ;;  %s135_s0 = inlined_call_operand.vmem [shape: f32[2,256], index: 0, kind: input, shape index: {}]   ;;  %s136_s1 = inlined_call_operand.vmem [shape: f32[2,16,16], index: 1, kind: output, shape index: {}]  }
   0x1   :  { %v60_v0 = vld [vmem:[%s135_s0 + $0x2] sm:$0x3]  ;;  %v8_v1 = vld [vmem:[%s135_s0] sm:$0x3]  ;;  %s76_s0 = smov 112   ;;  %s79_s16 = smov 64  }
   0x2   :  { %7 = vst [vmem:[#allocation0 + $0x8] sm:$0x3] %v60_v0  ;;  %9 = vst [vmem:[#allocation0] sm:$0x3] %v8_v1  ;;  %s80_s17 = smov 48   ;;  %s81_s18 = smov 32  }
   0x3   :  { %s82_s19 = smov 16  }
   0x9   :  { %v18_v2 = vld.sshfl [vmem:[#allocation0] sm:$0xff pattern:$0x99999180]  }
   0xa   :  { %v10_v3 = vld [vmem:[#allocation0] sm:$0x3]   ;;  %19 = vrot.lane.b32.xlu0 %v18_v2, %s76_s0  ;;  %31 = vrot.lane.b32.xlu1 %v18_v2, %s77_s10  ;;  %v14_v4 = vld [vmem:[#allocation0 + $0x8] sm:$0x3]  }
   0xb   :  { %12 = vst.msk [vmem:[%s136_s1] ss:$16 sm:$0x3] %vm11_vm0, %v10_v3   ;;  %61 = vst.msk [vmem:[%s136_s1 + $0x8] ss:$16 sm:$0x3] %vm11_vm0, %v14_v4  }
   0xe   :  { %25 = vrot.lane.b32.xlu0 %v18_v2, %s78_s15  ;;  %37 = vrot.lane.b32.xlu1 %v18_v2, %s79_s16 }
  0x12   :  { %43 = vrot.lane.b32.xlu0 %v18_v2, %s80_s17  ;;  %49 = vrot.lane.b32.xlu1 %v18_v2, %s81_s18 }
  0x16   :  { %55 = vrot.lane.b32.xlu0 %v18_v2, %s82_s19 }
  0x7c   :  { %v20_v5 = vpop.permute.xlu0 %19   ;;  %v32_v6 = vpop.permute.xlu1 %31  }
  0x7d   :  { %62 = vst.msk [vmem:[%s136_s1 + $0x1] ss:$8 sm:$0xf] %vm11_vm0, %v20_v5   ;;  %64 = vst.msk [vmem:[%s136_s1 + $0x3] ss:$8 sm:$0xf] %vm11_vm0, %v32_v6  }
  0x80   :  { %v26_v7 = vpop.permute.xlu0 %25   ;;  %v38_v8 = vpop.permute.xlu1 %37  }
  0x81   :  { %63 = vst.msk [vmem:[%s136_s1 + $0x2] ss:$8 sm:$0xf] %vm11_vm0, %v26_v7   ;;  %65 = vst.msk [vmem:[%s136_s1 + $0x4] ss:$8 sm:$0xf] %vm11_vm0, %v38_v8  }
  0x84   :  { %v44_v9 = vpop.permute.xlu0 %43   ;;  %v50_v10 = vpop.permute.xlu1 %49  }
  0x85   :  { %66 = vst.msk [vmem:[%s136_s1 + $0x5] ss:$8 sm:$0xf] %vm11_vm0, %v44_v9   ;;  %67 = vst.msk [vmem:[%s136_s1 + $0x6] ss:$8 sm:$0xf] %vm11_vm0, %v50_v10  }
  0x88   :  { %v56_v11 = vpop.permute.xlu0 %55  }
  0x89   :  { %68 = vst.msk [vmem:[%s136_s1 + $0x7] ss:$8 sm:$0xf] %vm11_vm0, %v56_v11  }

// kernel: forward.1
= control target key start
LH: loop header
LB: loop body
LE: loop exit
PB: predicated region body
PF: predicated region fallthrough
CT: control target
= control target key end

     0   :  { %8 = vsyncpa [#allocation3], 0  ;;  %s1359_s12 = smov [#allocation2]   ;;  %s1533_s0 = inlined_call_operand.vmem [shape: f32[32,32], index: 0, kind: input, shape index: {}]   ;;  %s1534_s1 = inlined_call_operand.vmem [shape: f32[2,32], index: 1, kind: input, shape index: {}]   ;;  %s1535_s2 = inlined_call_operand.hbm [shape: f32[208,256], index: 2, kind: input, shape index: {}]   ;;  %s1536_s3 = inlined_call_operand.vmem [shape: f32[2,256], index: 3, kind: output, shape index: {}]  }
   0x1   :  { %s18_s13 = sshll.u32 %s1359_s12, 4  ;;  %s1335_s16 = scalar_lea.hbm %s1535_s2, 6656  ;;  %s19_s13 = int_to_ptr.vmem [resolvable:$true] %s18_s13 }
   0x2   :  { %p1336_p0 = scmp.ne.s32.totalorder %s1535_s2, %s1335_s16  ;;  %p1339_p1 = scmp.lt.u32.totalorder %s1335_s16, %s1535_s2 }
   0x4   :  { %p1341_p2 = pnand %p1339_p1, %p1336_p0 }
   0x6   :  { %1344 = shalt.err (!%p1341_p2)
}
   0x7   :  { %s1345_s21 = scalar_lea.vmem %s19_s13, 6656  ;;  %p1350_p4 = scmp.lt.s32.totalorder %s19_s13, %s19_s13 }
   0x8   :  { %p1346_p3 = scmp.ne.s32.totalorder %s19_s13, %s1345_s21  ;;  %p1351_p5 = scmp.lt.s32.totalorder %s1345_s21, %s1345_s21 }
   0xa   :  { %p1352_p6 = por %p1351_p5, %p1350_p4 }
   0xc   :  { %p1353_p7 = pnand %p1352_p6, %p1346_p3 }
   0xe   :  { %1356 = shalt.err (!%p1353_p7)
}
   0xf   :  { %s1360_s22 = smov 256   ;;  %s1361_s23 = smov 16  }
  0x10   :  { %24 = dma.hbm_to_vmem [thread:$0]  %s1535_s2, 6656, %s19_s13, [#allocation3], %s1360_s22, %s1360_s22, %s1361_s23  }
  0x11   :  { %1357 = dma.done.wait [#allocation3], 6656  }
  0x12   :  { %1358 = vsyncadd [#allocation3], 4294960640  ;;  %v1362_v0 = vmov 0.0|0.0   ;;  %vm1363_vm0 = vmmov 0   ;;  %v1364_v1 = vmov 0.0   ;;  %v29_v2 = vld [vmem:[#allocation2] sm:$0xff]  ;;  %v188_v23 = vlaneseq }
  0x13   :  { %1253 = vmatprep.subr.bf16.mxu0 %v1362_v0  ;;  %1162 = vmatprep.mubr.msk.f32.mxu0 %vm1363_vm0, %v1364_v1  ;;  %v30_v3 = vld [vmem:[#allocation2 + $0x10] sm:$0xff]  ;;  %v31_v4 = vld [vmem:[#allocation2 + $0x20] sm:$0xff]  ;;  %vm34_vm1 = vcmask 261120   ;;  %v208_v26 = vld [vmem:[%s1533_s0 + $0x8] sm:$0xff]  ;;  %vm263_vm10 = vcmask 130048   ;;  %vm907_vm11 = vcmask 130112  }
  0x14   :  { %1259 = vmatprep.subr.bf16.mxu1 %v1362_v0  ;;  %1173 = vmatprep.mubr.msk.f32.mxu1 %vm1363_vm0, %v1364_v1  ;;  %v1254_v5 = vpack.c.bf16 %v30_v3, %v29_v2  ;;  %v32_v6 = vld [vmem:[#allocation2 + $0x30] sm:$0xff]  ;;  %v109_v7 = vld [vmem:[#allocation2 + $0x40] sm:$0xff]  ;;  %v210_v27 = vld [vmem:[%s1533_s0 + $0x18] sm:$0xff]  ;;  %v1422_v28 = vshrl.u32 %v188_v23, 7  ;;  %v1424_v29 = vand.u32 127, %v188_v23  ;;  %vm212_vm4 = vcmp.ne.f32.partialorder %v208_v26, 0.0 }
  0x15   :  { %v110_v8 = vld [vmem:[#allocation2 + $0x50] sm:$0xff]  ;;  %v1257_v9 = vpack.c.bf16 %v32_v6, %v31_v4  ;;  %v28_v11 = vld [vmem:[%s1534_s1] sm:$0x3]  ;;  %vm214_vm5 = vcmp.ne.f32.partialorder %v210_v27, 0.0  ;;  %v1075_v36 = vsel %vm212_vm4, 1.0, %v1364_v1  ;;  %vm935_vm12 = vcmask 261312  }
  0x16   :  { %1255 = vmatpush3.bf16.msra.mxu0 %v1254_v5  ;;  %v1260_v10 = vpack.c.bf16 %v110_v8, %v109_v7  ;;  %v111_v12 = vld [vmem:[#allocation2 + $0x60] sm:$0xff]  ;;  %v112_v13 = vld [vmem:[#allocation2 + $0x70] sm:$0xff]  ;;  %vm195_vm6 = vcmp.eq.s32.totalorder %v1422_v28, %v1424_v29  ;;  %v191_v31 = vadd.s32 16, %v1422_v28  ;;  %v190_v32 = vadd.s32 8, %v1422_v28 }
  0x17   :  { %1256 = vmatprep.subr.bf16.mxu0 %v1362_v0  ;;  %v1263_v14 = vpack.c.bf16 %v112_v13, %v111_v12  ;;  %v33_v15 = vld [vmem:[#allocation2 + $0x190] ss:$0 sm:$0xff]  ;;  %v261_v20 = vld [vmem:[#allocation2 + $0xa0] sm:$0xff]  ;;  %v192_v33 = vadd.s32 24, %v1422_v28  ;;  %v1070_v34 = vsel %vm195_vm6, 1.0, %v1364_v1  ;;  %v1077_v37 = vsel %vm214_vm5, 1.0, %v1364_v1 }
  0x18   :  { %1261 = vmatpush3.bf16.msra.mxu1 %v1260_v10  ;;  %v262_v21 = vld [vmem:[#allocation2 + $0xb0] sm:$0xff]  ;;  %v207_v24 = vld [vmem:[%s1533_s0] sm:$0xff]  ;;  %vm197_vm7 = vcmp.eq.s32.totalorder %v191_v31, %v1424_v29  ;;  %vm196_vm8 = vcmp.eq.s32.totalorder %v190_v32, %v1424_v29  ;;  %v1365_v8 = vmov 1966171168   ;;  %vm918_vm13 = vcmask 1041409  }
  0x19   :  { %1262 = vmatprep.subr.bf16.mxu1 %v1362_v0  ;;  %v1266_v22 = vpack.c.bf16 %v262_v21, %v261_v20  ;;  %v209_v25 = vld [vmem:[%s1533_s0 + $0x10] sm:$0xff]  ;;  %vm211_vm2 = vcmp.ne.f32.partialorder %v207_v24, 0.0  ;;  %vm198_vm9 = vcmp.eq.s32.totalorder %v192_v33, %v1424_v29  ;;  %v1072_v39 = vsel %vm197_vm7, 1.0, %v1364_v1  ;;  %v478_v5 = vld [vmem:[#allocation2 + $0xc0] sm:$0xff] }
  0x1a   :  { %1258 = vmatpush3.bf16.msra.mxu0 %v1257_v9  ;;  %vm213_vm3 = vcmp.ne.f32.partialorder %v209_v25, 0.0  ;;  %v1074_v30 = vsel %vm211_vm2, 1.0, %v1364_v1  ;;  %v1071_v40 = vsel %vm196_vm8, 1.0, %v1364_v1  ;;  %v1073_v41 = vsel %vm198_vm9, 1.0, %v1364_v1  ;;  %v113_v52 = vld [vmem:[#allocation2 + $0x191] ss:$0 sm:$0xff] }
  0x1b   :  { %1265 = vmatprep.subr.bf16.mxu0 %v1362_v0  ;;  %v1076_v35 = vsel %vm213_vm3, 1.0, %v1364_v1  ;;  %v223_v38 = vmax.f32 %v1074_v30, %v1070_v34  ;;  %v1445_v44 = vmax.f32 %v1075_v36, %v1071_v40  ;;  %v1447_v45 = vmax.f32 %v1077_v37, %v1073_v41  ;;  %v479_v6 = vld [vmem:[#allocation2 + $0xd0] sm:$0xff]  ;;  %v337_v21 = vld [vmem:[#allocation2 + $0x80] sm:$0xff] }
  0x1c   :  { %1264 = vmatpush3.bf16.msra.mxu1 %v1263_v14  ;;  %v1443_v43 = vmax.f32 %v1076_v35, %v1072_v39  ;;  %v1276_v7 = vpack.c.bf16 %v479_v6, %v478_v5  ;;  %v341_v9 = vunpack.c.l.s4 %v1365_v8  ;;  %v672_v8 = vld [vmem:[#allocation2 + $0x130] sm:$0xff] }
  0x1d   :  { %1163 = vmatmul.mubr.msk.f32.vlgmr.msra.gmra.mrb[0].mxu0 %vm34_vm1, %v28_v11  ;;  %v227_v42 = vsel %vm34_vm1, %v223_v38, 0.0  ;;  %v230_v47 = vsel %vm34_vm1, %v1445_v44, 0.0  ;;  %v236_v49 = vsel %vm34_vm1, %v1447_v45, 0.0 }
  0x1e   :  { %1180 = vmatprep.mubr.msk.f32.mxu0 %vm1363_vm0, %v1364_v1  ;;  %1267 = vmatpush3.bf16.msra.mxu0 %v1266_v22  ;;  %v233_v46 = vsel %vm34_vm1, %v1443_v43, 0.0  ;;  %v243_v48 = vadd.f32 %v230_v47, %v227_v42  ;;  %v342_v10 = vunpack.c.0.s8 %v341_v9  ;;  %v338_v22 = vld [vmem:[#allocation2 + $0x90] sm:$0xff] }
  0x1f   :  { %228 = vadd.xlane.f32.xlu0 %v227_v42  ;;  %234 = vadd.xlane.f32.xlu1 %v233_v46 }
  0x20   :  { %v244_v50 = vadd.f32 %v243_v48, %v233_v46  ;;  %1277 = vmatprep.subr.bf16.mxu0 %v1276_v7  ;;  %v345_v13 = vsub.s32 %v342_v10, %v1422_v28  ;;  %v376_v46 = vld [vmem:[#allocation2 + $0x192] ss:$0 sm:$0xff]  ;;  %v579_v10 = vld [vmem:[#allocation2 + $0x193] ss:$0 sm:$0xff] }
  0x22   :  { %v245_v51 = vadd.f32 %v244_v50, %v236_v49 }
  0x23   :  { %231 = vadd.xlane.f32.xlu0 %v230_v47  ;;  %237 = vadd.xlane.f32.xlu1 %v236_v49 }
  0x24   :  { %v246_v57 = vrot.slane %v245_v51, 4 }
  0x26   :  { %v247_v58 = vadd.f32 %v246_v57, %v245_v51 }
  0x28   :  { %v248_v59 = vrot.slane %v247_v58, 2 }
  0x2a   :  { %v249_v60 = vadd.f32 %v248_v59, %v247_v58 }
  0x2c   :  { %v250_v61 = vrot.slane %v249_v60, 1 }
  0x2e   :  { %v251_v63 = vadd.f32 %v250_v61, %v249_v60  ;;  %v669_v60 = vld [vmem:[#allocation2 + $0x100] sm:$0xff]  ;;  %v670_v61 = vld [vmem:[#allocation2 + $0x110] sm:$0xff] }
  0xac   :  { %v229_v62 = vpop.xlane.xlu0 %228  ;;  %v235_v11 = vpop.xlane.xlu1 %234 }
  0xad   :  { %1325 = vrsqrt.f32 %v229_v62  ;;  %v1292_v62 = vpack.c.bf16 %v670_v61, %v669_v60 }
  0xae   :  { %1327 = vrsqrt.f32 %v251_v63 }
  0xb0   :  { %v232_v12 = vpop.xlane.xlu0 %231  ;;  %v238_v14 = vpop.xlane.xlu1 %237 }
  0xb1   :  { %1329 = vrsqrt.f32 %v232_v12 }
  0xb2   :  { %1331 = vrsqrt.f32 %v235_v11 }
  0xb3   :  { %1333 = vrsqrt.f32 %v238_v14 }
  0xb7   :  { %v1326_v0 = vpop.eup %1325 }
  0xb8   :  { %v1328_v2 = vpop.eup %1327  ;;  %v253_v3 = vmul.f32 %v1326_v0, %v223_v38 }
  0xba   :  { %v1459_v4 = vmul.f32 %v1328_v2, %v253_v3 }
  0xbb   :  { %v1330_v30 = vpop.eup %1329 }
  0xbc   :  { %v1332_v31 = vpop.eup %1331  ;;  %v254_v35 = vmul.f32 %v1330_v30, %v1445_v44  ;;  %v481_v44 = vld [vmem:[#allocation2 + $0xf0] sm:$0xff] }
  0xbd   :  { %v1334_v37 = vpop.eup %1333  ;;  %v255_v38 = vmul.f32 %v1332_v31, %v1443_v43  ;;  %v480_v43 = vld [vmem:[#allocation2 + $0xe0] sm:$0xff]  ;;  %v770_v31 = vld [vmem:[#allocation2 + $0x194] ss:$0 sm:$0xff] }
  0xbe   :  { %v1471_v39 = vmul.f32 %v1328_v2, %v254_v35  ;;  %v256_v40 = vmul.f32 %v1334_v37, %v1447_v45  ;;  %v1280_v45 = vpack.c.bf16 %v481_v44, %v480_v43  ;;  %v877_v43 = vld [vmem:[#allocation2 + $0x196] ss:$0 sm:$0xff] }
  0xbf   :  { %v1474_v41 = vmul.f32 %v1328_v2, %v255_v38 }
  0xc0   :  { %v1478_v42 = vmul.f32 %v1328_v2, %v256_v40 }
  0xf0   :  { %v104_v16 = vpop.f32.mrb[0].mxu0 }
  0xf1   :  { %v105_v17 = vadd.f32 %v104_v16, %v33_v15  ;;  %v1164_v18 = vpop.f32.mrb[1].mxu0 }
  0xf3   :  { %v108_v19 = vmax.f32 %v105_v17, 0.0  ;;  %v1465_v17 = vsub.s32 0, %v1422_v28 }
  0xf5   :  { %1174 = vmatmul.mubr.msk.f32.vlgmr.msra.gmra.mrb[0].mxu1 %vm34_vm1, %v108_v19 }
  0xf6   :  { %1191 = vmatprep.mubr.msk.f32.mxu1 %vm34_vm1, %v1459_v4 }
 0x1c8   :  { %v183_v53 = vpop.f32.mrb[0].mxu1 }
 0x1c9   :  { %v1455_v54 = vadd.f32 %v183_v53, %v113_v52  ;;  %v1175_v55 = vpop.f32.mrb[1].mxu1 }
 0x1cb   :  { %v187_v56 = vmax.f32 %v1455_v54, 0.0 }
 0x1cd   :  { %1181 = vmatmul.mubr.msk.f32.vlgmr.msra.gmra.mrb[2].mxu0 %vm263_vm10, %v187_v56 }
 0x1ce   :  { %1279 = vmatpush3.bf16.msra.mxu0 %v1276_v7  ;;  %v671_v7 = vld [vmem:[#allocation2 + $0x120] sm:$0xff] }
 0x1cf   :  { %1281 = vmatprep.subr.bf16.mxu0 %v1280_v45  ;;  %v1296_v9 = vpack.c.bf16 %v672_v8, %v671_v7  ;;  %v954_v7 = vld [vmem:[#allocation2 + $0x168] sm:$0xff]  ;;  %v956_v8 = vld [vmem:[#allocation2 + $0x178] sm:$0xff] }
 0x1d2   :  { %1283 = vmatpush3.bf16.msra.mxu0 %v1280_v45 }
 0x1d3   :  { %1293 = vmatprep.subr.bf16.mxu0 %v1292_v62 }
 0x2a0   :  { %v333_v15 = vpop.f32.mrb[2].mxu0 }
 0x2a1   :  { %v346_v16 = vrot.slane %v333_v15, %v345_v13  ;;  %v1182_v18 = vpop.f32.mrb[3].mxu0 }
 0x2a3   :  { %v347_v19 = vcombine.high %v346_v16, %v346_v16  ;;  %v354_v20 = vrot.slane %v346_v16, %v345_v13 }
 0x2a5   :  { %v361_v23 = vrot.slane %v347_v19, %v345_v13  ;;  %v365_v24 = vrot.slane %v354_v20, %v1465_v17 }
 0x2a7   :  { %v369_v25 = vrot.slane %v361_v23, %v1465_v17  ;;  %v372_v26 = vadd.f32 %v365_v24, %v337_v21  ;;  %v373_v27 = vadd.f32 %v365_v24, %v338_v22 }
 0x2a9   :  { %v1268_v32 = vpack.c.bf16 %v373_v27, %v372_v26  ;;  %v374_v33 = vadd.f32 %v369_v25, %v337_v21  ;;  %v375_v34 = vadd.f32 %v369_v25, %v338_v22 }
 0x2ab   :  { %1269 = vmatprep.subr.bf16.mxu1 %v1268_v32  ;;  %v1272_v36 = vpack.c.bf16 %v375_v34, %v374_v33 }
 0x2ac   :  { %1271 = vmatpush3.bf16.msra.mxu1 %v1268_v32 }
 0x2ad   :  { %1273 = vmatprep.subr.bf16.mxu1 %v1272_v36 }
 0x2b0   :  { %1275 = vmatpush3.bf16.msra.mxu1 %v1272_v36  ;;  %v860_v36 = vld [vmem:[#allocation2 + $0x195] ss:$0 sm:$0xff] }
 0x2b3   :  { %1192 = vmatmul.mubr.msk.f32.vlgmr.msra.gmra.mrb[2].mxu1 %vm34_vm1, %v1471_v39 }
 0x2b4   :  { %1194 = vmatprep.mubr.msk.f32.mxu1 %vm34_vm1, %v1474_v41 }
 0x2b7   :  { %1195 = vmatmul.mubr.msk.f32.gmra.mrb[4].mxu1 %vm34_vm1, %v1478_v42 }
 0x2b8   :  { %1219 = vmatprep.mubr.msk.f32.mxu1 %vm34_vm1, %v1459_v4 }
 0x386   :  { %v1193_v47 = vpop.f32.mrb[2].mxu1 }
 0x387   :  { %v461_v48 = vadd.f32 %v1193_v47, %v376_v46  ;;  %v455_v49 = vpop.f32.mrb[3].mxu1 }
 0x388   :  { %v456_v50 = vadd.f32 %v455_v49, %v376_v46 }
 0x389   :  { %v475_v53 = vmax.f32 %v461_v48, 0.0 }
 0x38a   :  { %v474_v51 = vmax.f32 %v456_v50, 0.0  ;;  %v1196_v52 = vpop.f32.mrb[4].mxu1 }
 0x38b   :  { %v471_v55 = vadd.f32 %v1196_v52, %v376_v46  ;;  %v465_v56 = vpop.f32.mrb[5].mxu1 }
 0x38c   :  { %v466_v57 = vadd.f32 %v465_v56, %v376_v46  ;;  %1205 = vmatprep.mubr.msk.f32.mxu0 %vm34_vm1, %v474_v51 }
 0x38d   :  { %1206 = vmatmul.mubr.msk.f32.vlgmr.msra.gmra.mrb[4].mxu0 %vm34_vm1, %v475_v53  ;;  %v477_v59 = vmax.f32 %v471_v55, 0.0 }
 0x38e   :  { %v476_v58 = vmax.f32 %v466_v57, 0.0  ;;  %1295 = vmatpush3.bf16.msra.mxu0 %v1292_v62 }
 0x38f   :  { %1297 = vmatprep.subr.bf16.mxu0 %v1296_v9 }
 0x390   :  { %1208 = vmatprep.mubr.msk.f32.mxu0 %vm34_vm1, %v476_v58 }
 0x391   :  { %1209 = vmatmul.mubr.msk.f32.gmra.mrb[6].mxu0 %vm34_vm1, %v477_v59 }
 0x392   :  { %1299 = vmatpush3.bf16.msra.mxu0 %v1296_v9  ;;  %v1312_v9 = vpack.c.bf16 %v956_v8, %v954_v7 }
 0x460   :  { %v1207_v63 = vpop.f32.mrb[4].mxu0 }
 0x461   :  { %v560_v0 = vpop.f32.mrb[5].mxu0 }
 0x462   :  { %v1284_v2 = vpack.c.bf16 %v1207_v63, %v560_v0  ;;  %v950_v63 = vld [vmem:[#allocation2 + $0x148] sm:$0xff]  ;;  %v952_v0 = vld [vmem:[#allocation2 + $0x158] sm:$0xff] }
 0x464   :  { %v1210_v3 = vpop.f32.mrb[6].mxu0  ;;  %1285 = vmatprep.subr.bf16.mxu1 %v1284_v2 }
 0x465   :  { %v570_v5 = vpop.f32.mrb[7].mxu0  ;;  %1287 = vmatpush3.bf16.msra.mxu1 %v1284_v2  ;;  %v1308_v2 = vpack.c.bf16 %v952_v0, %v950_v63 }
 0x466   :  { %v1288_v6 = vpack.c.bf16 %v1210_v3, %v570_v5  ;;  %v949_v3 = vld [vmem:[#allocation2 + $0x140] sm:$0xff]  ;;  %v951_v5 = vld [vmem:[#allocation2 + $0x150] sm:$0xff] }
 0x467   :  { %1309 = vmatprep.subr.bf16.mxu0 %v1308_v2 }
 0x468   :  { %1289 = vmatprep.subr.bf16.mxu1 %v1288_v6 }
 0x469   :  { %1291 = vmatpush3.bf16.msra.mxu1 %v1288_v6  ;;  %v1310_v6 = vpack.c.bf16 %v951_v5, %v949_v3 }
 0x46c   :  { %1220 = vmatmul.mubr.msk.f32.vlgmr.msra.gmra.mrb[6].mxu1 %vm34_vm1, %v1471_v39 }
 0x46d   :  { %1222 = vmatprep.mubr.msk.f32.mxu1 %vm34_vm1, %v1474_v41 }
 0x470   :  { %1223 = vmatmul.mubr.msk.f32.gmra.mrb[8].mxu1 %vm34_vm1, %v1478_v42 }
 0x471   :  { %1247 = vmatprep.mubr.msk.f32.mxu1 %vm34_vm1, %v1459_v4 }
 0x53f   :  { %v1221_v11 = vpop.f32.mrb[6].mxu1 }
 0x540   :  { %v652_v12 = vadd.f32 %v1221_v11, %v579_v10  ;;  %v646_v13 = vpop.f32.mrb[7].mxu1  ;;  %v955_v11 = vld [vmem:[#allocation2 + $0x170] sm:$0xff] }
 0x541   :  { %v647_v14 = vadd.f32 %v646_v13, %v579_v10 }
 0x542   :  { %v666_v18 = vmax.f32 %v652_v12, 0.0 }
 0x543   :  { %v665_v15 = vmax.f32 %v647_v14, 0.0  ;;  %v1224_v16 = vpop.f32.mrb[8].mxu1 }
 0x544   :  { %v662_v19 = vadd.f32 %v1224_v16, %v579_v10  ;;  %v656_v20 = vpop.f32.mrb[9].mxu1  ;;  %v930_v16 = vadd.s32 4294967272, %v1424_v29 }
 0x545   :  { %v657_v21 = vadd.f32 %v656_v20, %v579_v10  ;;  %1233 = vmatprep.mubr.msk.f32.mxu0 %vm34_vm1, %v665_v15  ;;  %v953_v10 = vld [vmem:[#allocation2 + $0x160] sm:$0xff]  ;;  %v902_v15 = vadd.s32 4294967288, %v1424_v29 }
 0x546   :  { %1234 = vmatmul.mubr.msk.f32.vlgmr.msra.gmra.mrb[8].mxu0 %vm34_vm1, %v666_v18  ;;  %v668_v22 = vmax.f32 %v662_v19, 0.0  ;;  %v1314_v12 = vpack.c.bf16 %v955_v11, %v953_v10  ;;  %v925_v19 = vadd.s32 4294967280, %v1424_v29 }
 0x547   :  { %v667_v4 = vmax.f32 %v657_v21, 0.0  ;;  %1311 = vmatpush1.bf16.msra.mxu0 %v1310_v6  ;;  %v905_v21 = vsub.s32 %v902_v15, %v1422_v28 }
 0x548   :  { %1313 = vmatprep.subr.bf16.mxu0 %v1312_v9 }
 0x549   :  { %1236 = vmatprep.mubr.msk.f32.mxu0 %vm34_vm1, %v667_v4  ;;  %v900_v4 = vsub.s32 %v1424_v29, %v1422_v28 }
 0x54a   :  { %1237 = vmatmul.mubr.msk.f32.gmra.mrb[10].mxu0 %vm34_vm1, %v668_v22  ;;  %v933_v22 = vsub.s32 %v930_v16, %v1422_v28 }
 0x54b   :  { %1044 = vmatprep.mubr.f32.mxu0 %v1364_v1  ;;  %v1366_v1 = vmov 16   ;;  %1315 = vmatpush1.bf16.msra.mxu0 %v1314_v12 }
 0x54c   :  { %1324 = vset.pattern.permute.xlu0 %v1366_v1 }
 0x619   :  { %v1235_v23 = vpop.f32.mrb[8].mxu0 }
 0x61a   :  { %v751_v24 = vpop.f32.mrb[9].mxu0 }
 0x61b   :  { %v1300_v25 = vpack.c.bf16 %v1235_v23, %v751_v24  ;;  %v928_v23 = vsub.s32 %v925_v19, %v1422_v28 }
 0x61d   :  { %v1238_v26 = vpop.f32.mrb[10].mxu0  ;;  %1301 = vmatprep.subr.bf16.mxu1 %v1300_v25 }
 0x61e   :  { %v761_v27 = vpop.f32.mrb[11].mxu0  ;;  %1303 = vmatpush3.bf16.msra.mxu1 %v1300_v25 }
 0x61f   :  { %v1304_v30 = vpack.c.bf16 %v1238_v26, %v761_v27 }
 0x621   :  { %1305 = vmatprep.subr.bf16.mxu1 %v1304_v30 }
 0x622   :  { %1307 = vmatpush3.bf16.msra.mxu1 %v1304_v30 }
 0x625   :  { %1248 = vmatmul.mubr.msk.f32.vlgmr.msra.gmra.mrb[10].mxu1 %vm34_vm1, %v1471_v39 }
 0x626   :  { %1250 = vmatprep.mubr.msk.f32.mxu1 %vm34_vm1, %v1474_v41 }
 0x629   :  { %1251 = vmatmul.mubr.msk.f32.gmra.mrb[12].mxu1 %vm34_vm1, %v1478_v42 }
 0x6f8   :  { %v1249_v32 = vpop.f32.mrb[10].mxu1 }
 0x6f9   :  { %v843_v33 = vadd.f32 %v1249_v32, %v770_v31  ;;  %v837_v34 = vpop.f32.mrb[11].mxu1 }
 0x6fa   :  { %v838_v35 = vadd.f32 %v837_v34, %v770_v31 }
 0x6fb   :  { %v857_v37 = vmax.f32 %v843_v33, 0.0 }
 0x6fc   :  { %v856_v38 = vmax.f32 %v838_v35, 0.0  ;;  %v1252_v40 = vpop.f32.mrb[12].mxu1 }
 0x6fd   :  { %v853_v44 = vadd.f32 %v1252_v40, %v770_v31  ;;  %v847_v39 = vpop.f32.mrb[13].mxu1  ;;  %v862_v45 = vmul.f32 %v860_v36, %v857_v37  ;;  %v879_v48 = vmul.f32 %v877_v43, %v857_v37 }
 0x6fe   :  { %v848_v46 = vadd.f32 %v847_v39, %v770_v31  ;;  %v861_v41 = vmul.f32 %v860_v36, %v856_v38  ;;  %v878_v51 = vmul.f32 %v877_v43, %v856_v38  ;;  %v958_v39 = vld [vmem:[#allocation2 + $0x180] ss:$8 sm:$0x3] }
 0x6ff   :  { %v859_v47 = vmax.f32 %v853_v44, 0.0  ;;  %v868_v42 = vsel %vm34_vm1, %v862_v45, 0.0  ;;  %v885_v52 = vsel %vm34_vm1, %v879_v48, 0.0  ;;  %v971_v45 = vsub.s32 1, %v1422_v28 }
 0x700   :  { %v858_v49 = vmax.f32 %v848_v46, 0.0  ;;  %869 = vadd.xlane.f32.xlu1 %v868_v42  ;;  %v865_v50 = vsel %vm34_vm1, %v861_v41, 0.0  ;;  %v882_v55 = vsel %vm34_vm1, %v878_v51, 0.0  ;;  %v968_v46 = vrot.slane %v958_v39, %v1465_v17 }
 0x701   :  { %866 = vadd.xlane.f32.xlu0 %v865_v50  ;;  %v864_v53 = vmul.f32 %v860_v36, %v859_v47  ;;  %v881_v58 = vmul.f32 %v877_v43, %v859_v47  ;;  %v972_v41 = vrot.slane %v958_v39, %v971_v45 }
 0x702   :  { %v863_v56 = vmul.f32 %v860_v36, %v858_v49  ;;  %v880_v60 = vmul.f32 %v877_v43, %v858_v49 }
 0x703   :  { %v874_v57 = vsel %vm34_vm1, %v864_v53, 0.0  ;;  %v891_v61 = vsel %vm34_vm1, %v881_v58, 0.0 }
 0x704   :  { %886 = vadd.xlane.f32.xlu1 %v885_v52  ;;  %v871_v59 = vsel %vm34_vm1, %v863_v56, 0.0  ;;  %v888_v62 = vsel %vm34_vm1, %v880_v60, 0.0 }
 0x705   :  { %883 = vadd.xlane.f32.xlu0 %v882_v55 }
 0x708   :  { %875 = vadd.xlane.f32.xlu1 %v874_v57 }
 0x709   :  { %872 = vadd.xlane.f32.xlu0 %v871_v59 }
 0x70c   :  { %892 = vadd.xlane.f32.xlu1 %v891_v61 }
 0x70d   :  { %889 = vadd.xlane.f32.xlu0 %v888_v62 }
 0x723   :  { %961 = vperm.xlu0 %1324, %v1455_v54  }
 0x78d   :  { %v870_v13 = vpop.xlane.xlu1 %869 }
 0x78e   :  { %v867_v14 = vpop.xlane.xlu0 %866  ;;  %v906_v27 = vrot.slane %v870_v13, %v905_v21 }
 0x78f   :  { %v901_v30 = vrot.slane %v867_v14, %v900_v4 }
 0x791   :  { %v887_v18 = vpop.xlane.xlu1 %886  ;;  %v908_v36 = vsel %vm907_vm11, %v906_v27, %v901_v30 }
 0x792   :  { %v884_v20 = vpop.xlane.xlu0 %883  ;;  %v934_v1 = vrot.slane %v887_v18, %v933_v22 }
 0x793   :  { %v929_v31 = vrot.slane %v884_v20, %v928_v23 }
 0x795   :  { %v876_v54 = vpop.xlane.xlu1 %875  ;;  %v936_v37 = vsel %vm935_vm12, %v934_v1, %v929_v31 }
 0x796   :  { %v873_v24 = vpop.xlane.xlu0 %872  ;;  %v916_v25 = vrot.slane %v876_v54, %v905_v21 }
 0x797   :  { %v912_v26 = vrot.slane %v873_v24, %v900_v4 }
 0x799   :  { %v893_v32 = vpop.xlane.xlu1 %892  ;;  %v917_v35 = vsel %vm907_vm11, %v916_v25, %v912_v26 }
 0x79a   :  { %v944_v33 = vrot.slane %v893_v32, %v933_v22  ;;  %v890_v34 = vpop.xlane.xlu0 %889  ;;  %v919_v40 = vsel %vm918_vm13, %v917_v35, %v908_v36 }
 0x79b   :  { %v940_v29 = vrot.slane %v890_v34, %v928_v23 }
 0x79d   :  { %v945_v38 = vsel %vm935_vm12, %v944_v33, %v940_v29 }
 0x79e   :  { %v946_v43 = vsel %vm918_vm13, %v945_v38, %v936_v37 }
 0x79f   :  { %v948_v44 = vsel %vm263_vm10, %v919_v40, %v946_v43 }
 0x7a0   :  { %1099 = vmatmul.mubr.msk.f32.vlgmr.msra.gmra.mrb[12].mxu0 %vm34_vm1, %v948_v44 }
 0x7a2   :  { %v962_v47 = vpop.permute.xlu0 %961 }
 0x7a3   :  { %v975_v42 = vmul.f32 %v968_v46, %v962_v47  ;;  %v976_v48 = vmul.f32 %v972_v41, %v962_v47 }
 0x873   :  { %v1046_v49 = vpop.f32.mrb[12].mxu0 }
 0x874   :  { %v1047_v50 = vadd.f32 %v1046_v49, %v975_v42  ;;  %v1048_v51 = vpop.f32.mrb[13].mxu0 }
 0x875   :  { %v1049_v52 = vadd.f32 %v1048_v51, %v976_v48 }
 0x877   :  { %v1053_v53 = vcombine.low %v1047_v50, %v1049_v52 }
 0x879   :  { %1100 = vst.sshfl [vmem:[%s1536_s3] sm:$0x33 pattern:$0x76325410] %v1053_v53 }
 0x87a   :  { %1067 = vsyncpa [#allocation3], 1 }

</bundles_post_ra>
